<compile_context>
chip_gen: v7x
topology: tpu7x:2x2x1
jax: 0.10.0
libtpu: 0.0.40
codegen_flags: <defaults>
</compile_context>

<pallas_src>
import jax
import jax.numpy as jnp
from jax.experimental import pallas as pl
from jax.experimental.pallas import tpu as pltpu


def _fusion_kernel(x1_ref, x2_ref, w1_ref, w2_ref, b_ref, o_ref):
    # x1_ref, x2_ref: [tb, D] VMEM tiles in the native activation dtype.
    # w1_ref, w2_ref: [1, D] f32 weight rows (resident; constant index map).
    # b_ref: (1, 1) f32 scalar in SMEM.  o_ref: [tb, 1] f32.
    #
    # The f32 upcast temps are bounded by the tile budget chosen in the
    # wrapper, so no extra in-kernel chunking of the reduction is needed.
    x1 = x1_ref[...].astype(jnp.float32)
    x2 = x2_ref[...].astype(jnp.float32)
    acc = jnp.sum(x1 * w1_ref[...], axis=-1, keepdims=True)        # VPU + XLU
    acc = acc + jnp.sum(x2 * w2_ref[...], axis=-1, keepdims=True)  # VPU + XLU
    acc = acc + b_ref[0, 0]                                        # scalar add
    o_ref[...] = jax.nn.sigmoid(acc).astype(o_ref.dtype)


def _round_up(x, m):
    return ((x + m - 1) // m) * m


def _pick_batch_tile(B, D, itemsize, max_batch_tile=None):
    """Rows per grid step.

    Budget ~4 MiB (f32-equivalent) per modality block so that
    2 modalities x 2 pipeline buffers + f32 upcast temps stay within
    roughly 24-32 MiB of VMEM: safe for v7x (64 MiB/TC) and for v5e's
    default scoped limit, while large enough to amortize per-step overhead.
    """
    align = 16 if itemsize < 4 else 8          # sublane alignment (bf16 packs 2 rows)
    budget_f32 = 4 << 20                       # per-modality block, f32-equivalent bytes
    tb = max(1, budget_f32 // (4 * D))
    tb = min(tb, 8192)
    if max_batch_tile is not None:
        tb = min(tb, max_batch_tile)
    tb = max(align, (tb // align) * align)
    if B <= tb:
        # Single grid step: a block equal to the full batch is always legal;
        # otherwise round the (partially out-of-bounds) block up to alignment.
        return B if (B % align == 0 or B < align) else _round_up(B, align)
    return tb


def cross_modality_fusion(x1, x2, w, b, *, max_batch_tile=None):
    """x1, x2: [B, D]; w: [1, 2*D] (PyTorch nn.Linear weight); b: [1]."""
    B, D = x1.shape
    assert x2.shape == (B, D)
    assert w.shape == (1, 2 * D)

    # Tiny parameter prep in the wrapper (no activation copies).
    w_f32 = w.astype(jnp.float32)
    w1 = w_f32[:, :D]                      # [1, D]
    w2 = w_f32[:, D:]                      # [1, D]
    b2d = b.reshape(1, 1).astype(jnp.float32)

    itemsize = jnp.dtype(x1.dtype).itemsize
    tb = _pick_batch_tile(B, D, itemsize, max_batch_tile)
    grid = (pl.cdiv(B, tb),)

    # Explicit scoped-VMEM budget: double-buffered native-dtype input blocks
    # for both modalities, f32 upcast temps, plus headroom.  Kept <= 48 MiB so
    # it stays within v7x's 64 MiB physical VMEM per TensorCore.
    in_block = tb * D * itemsize
    pipelined = 2 * 2 * in_block           # 2 modalities, 2 pipeline buffers
    temps = 2 * tb * D * 4                 # f32 upcasts (worst case)
    vmem_limit = int(min(max(pipelined + temps + (8 << 20), 32 << 20), 48 << 20))

    return pl.pallas_call(
        _fusion_kernel,
        out_shape=jax.ShapeDtypeStruct((B, 1), jnp.float32),
        grid_spec=pltpu.PrefetchScalarGridSpec(
            num_scalar_prefetch=0,
            grid=grid,
            in_specs=[
                pl.BlockSpec((tb, D), lambda i: (i, 0)),            # x1 tile
                pl.BlockSpec((tb, D), lambda i: (i, 0)),            # x2 tile
                pl.BlockSpec((1, D), lambda i: (0, 0)),             # w1 (resident)
                pl.BlockSpec((1, D), lambda i: (0, 0)),             # w2 (resident)
                pl.BlockSpec(memory_space=pltpu.SMEM),              # bias scalar
            ],
            out_specs=pl.BlockSpec((tb, 1), lambda i: (i, 0)),
        ),
        compiler_params=pltpu.CompilerParams(
            dimension_semantics=("parallel",),
            vmem_limit_bytes=vmem_limit,
        ),
    )(x1, x2, w1, w2, b2d)


def _reference(x1, x2, w, b):
    # Matches the kernel's numerics: activations promoted to f32, f32 weights.
    x = jnp.concatenate((x1, x2), axis=1).astype(jnp.float32)
    return jax.nn.sigmoid(x @ w.astype(jnp.float32).T + b.astype(jnp.float32))


if __name__ == "__main__":
    key = jax.random.PRNGKey(0)
    k1, k2, kw, kb, k3, k4 = jax.random.split(key, 6)

    B = 8            # batch
    D = 32           # input_size per modality

    x1 = jax.random.normal(k1, (B, D), dtype=jnp.float32)
    x2 = jax.random.normal(k2, (B, D), dtype=jnp.float32)

    # Deterministic nn.Linear(2*D, 1)-style init (uniform in +/- 1/sqrt(2*D)).
    bound = 1.0 / jnp.sqrt(2.0 * D)
    w = jax.random.uniform(kw, (1, 2 * D), jnp.float32, -bound, bound)
    b = jax.random.uniform(kb, (1,), jnp.float32, -bound, bound)

    # 1) Small batch, f32 activations (single grid step).
    out = jax.block_until_ready(cross_modality_fusion(x1, x2, w, b))
    ref = _reference(x1, x2, w, b)
    assert out.shape == (B, 1)
    assert jnp.allclose(out, ref, atol=1e-5, rtol=1e-5), (out, ref)

    # 2) bf16 activations fed natively; kernel upcasts to f32 in VMEM.
    out_bf16 = jax.block_until_ready(
        cross_modality_fusion(x1.astype(jnp.bfloat16),
                              x2.astype(jnp.bfloat16), w, b))
    ref_bf16 = _reference(x1.astype(jnp.bfloat16), x2.astype(jnp.bfloat16), w, b)
    assert jnp.allclose(out_bf16, ref_bf16, atol=1e-5, rtol=1e-5), (out_bf16, ref_bf16)

    # 3) Larger, non-divisible batch: exercises the multi-step grid with a
    #    partial (masked) last block and the pipelined path.
    B2 = 200
    y1 = jax.random.normal(k3, (B2, D), dtype=jnp.float32)
    y2 = jax.random.normal(k4, (B2, D), dtype=jnp.float32)
    out_big = jax.block_until_ready(
        cross_modality_fusion(y1, y2, w, b, max_batch_tile=64))
    ref_big = _reference(y1, y2, w, b)
    assert out_big.shape == (B2, 1)
    assert jnp.allclose(out_big, ref_big, atol=1e-5, rtol=1e-5), (out_big, ref_big)

    print("KERNEL_OK")
</pallas_src>

<mosaic_0001>
module attributes {stable_mosaic.version = 11 : i64} {
  func.func @_fusion_kernel(%arg0: i32, %arg1: memref<8x32xf32, #tpu.memory_space<vmem>>, %arg2: memref<8x32xf32, #tpu.memory_space<vmem>>, %arg3: memref<1x32xf32, #tpu.memory_space<vmem>>, %arg4: memref<1x32xf32, #tpu.memory_space<vmem>>, %arg5: memref<1x1xf32, #tpu.memory_space<smem>>, %arg6: memref<8x1xf32, #tpu.memory_space<vmem>>) attributes {dimension_semantics = [#tpu.dimension_semantics<parallel>], iteration_bounds = array<i64: 1>, scalar_prefetch = 0 : i64, scratch_operands = 0 : i64, tpu.core_type = #tpu.core_type<tc>, window_params = [{transform_indices = @transform_0, window_bounds = array<i64: 8, 32>}, {transform_indices = @transform_1, window_bounds = array<i64: 8, 32>}, {pipeline_mode = #tpu.pipeline_mode<synchronous>, transform_indices = @transform_2, window_bounds = array<i64: 1, 32>}, {pipeline_mode = #tpu.pipeline_mode<synchronous>, transform_indices = @transform_3, window_bounds = array<i64: 1, 32>}, {transform_indices = @transform_4, window_bounds = array<i64: 1, 1>}, {transform_indices = @transform_5, window_bounds = array<i64: 8, 1>}]} {
    %c0 = arith.constant 0 : index
    %c0_0 = arith.constant 0 : index
    %0 = vector.load %arg1[%c0, %c0_0] : memref<8x32xf32, #tpu.memory_space<vmem>>, vector<8x32xf32>
    %c0_1 = arith.constant 0 : index
    %c0_2 = arith.constant 0 : index
    %1 = vector.load %arg2[%c0_1, %c0_2] : memref<8x32xf32, #tpu.memory_space<vmem>>, vector<8x32xf32>
    %c0_3 = arith.constant 0 : index
    %c0_4 = arith.constant 0 : index
    %2 = vector.load %arg3[%c0_3, %c0_4] : memref<1x32xf32, #tpu.memory_space<vmem>>, vector<1x32xf32>
    %3 = vector.broadcast %2 : vector<1x32xf32> to vector<8x32xf32>
    %4 = arith.mulf %0, %3 : vector<8x32xf32>
    %cst = arith.constant dense<0.000000e+00> : vector<8xf32>
    %5 = vector.multi_reduction <add>, %4, %cst [1] : vector<8x32xf32> to vector<8xf32>
    %6 = vector.shape_cast %5 : vector<8xf32> to vector<8x1xf32>
    %c0_5 = arith.constant 0 : index
    %c0_6 = arith.constant 0 : index
    %7 = vector.load %arg4[%c0_5, %c0_6] : memref<1x32xf32, #tpu.memory_space<vmem>>, vector<1x32xf32>
    %8 = vector.broadcast %7 : vector<1x32xf32> to vector<8x32xf32>
    %9 = arith.mulf %1, %8 : vector<8x32xf32>
    %cst_7 = arith.constant dense<0.000000e+00> : vector<8xf32>
    %10 = vector.multi_reduction <add>, %9, %cst_7 [1] : vector<8x32xf32> to vector<8xf32>
    %11 = vector.shape_cast %10 : vector<8xf32> to vector<8x1xf32>
    %12 = arith.addf %6, %11 : vector<8x1xf32>
    %c0_8 = arith.constant 0 : index
    %c0_9 = arith.constant 0 : index
    %13 = memref.load %arg5[%c0_8, %c0_9] : memref<1x1xf32, #tpu.memory_space<smem>>
    %14 = vector.broadcast %13 : f32 to vector<8x1xf32>
    %15 = arith.addf %12, %14 : vector<8x1xf32>
    %16 = arith.negf %15 : vector<8x1xf32>
    %17 = math.exp %16 : vector<8x1xf32>
    %cst_10 = arith.constant 1.000000e+00 : f32
    %18 = vector.broadcast %cst_10 : f32 to vector<8x1xf32>
    %19 = arith.addf %18, %17 : vector<8x1xf32>
    %20 = arith.divf %18, %19 : vector<8x1xf32>
    %c0_11 = arith.constant 0 : index
    %c0_12 = arith.constant 0 : index
    %21 = vector.load %arg6[%c0_11, %c0_12] : memref<8x1xf32, #tpu.memory_space<vmem>>, vector<8x1xf32>
    tpu.vector_store %arg6[%c0_11, %c0_12], %20 {strides = array<i32>} : memref<8x1xf32, #tpu.memory_space<vmem>>, vector<8x1xf32>,
    return
  }
  func.func @transform_0(%arg0: i32) -> (i32, i32) {
    %c0_i32 = arith.constant 0 : i32
    %c0_i32_0 = arith.constant 0 : i32
    return %arg0, %c0_i32 : i32, i32
  }
  func.func @transform_1(%arg0: i32) -> (i32, i32) {
    %c0_i32 = arith.constant 0 : i32
    %c0_i32_0 = arith.constant 0 : i32
    return %arg0, %c0_i32 : i32, i32
  }
  func.func @transform_2(%arg0: i32) -> (i32, i32) {
    %c0_i32 = arith.constant 0 : i32
    %c0_i32_0 = arith.constant 0 : i32
    %c0_i32_1 = arith.constant 0 : i32
    return %c0_i32, %c0_i32_0 : i32, i32
  }
  func.func @transform_3(%arg0: i32) -> (i32, i32) {
    %c0_i32 = arith.constant 0 : i32
    %c0_i32_0 = arith.constant 0 : i32
    %c0_i32_1 = arith.constant 0 : i32
    return %c0_i32, %c0_i32_0 : i32, i32
  }
  func.func @transform_4(%arg0: i32) -> (i32, i32) {
    %c0_i32 = arith.constant 0 : i32
    %c0_i32_0 = arith.constant 0 : i32
    %c0_i32_1 = arith.constant 0 : i32
    return %c0_i32, %c0_i32_0 : i32, i32
  }
  func.func @transform_5(%arg0: i32) -> (i32, i32) {
    %c0_i32 = arith.constant 0 : i32
    %c0_i32_0 = arith.constant 0 : i32
    return %arg0, %c0_i32 : i32, i32
  }
}

</mosaic_0001>

<bundles_post_ra>
// kernel: tpu_custom_call.1
= control target key start
LH: loop header
LB: loop body
LE: loop exit
PB: predicated region body
PF: predicated region fallthrough
CT: control target
= control target key end

     0   :  { %11 = vsyncpa [#allocation4], 0  ;;  %s213_s0 = inlined_call_operand.hbm [shape: f32[8,32], index: 0, kind: input, shape index: {}]   ;;  %s214_s1 = inlined_call_operand.hbm [shape: f32[8,32], index: 1, kind: input, shape index: {}]   ;;  %s215_s2 = inlined_call_operand.vmem [shape: f32[1,32], index: 2, kind: input, shape index: {}]   ;;  %s216_s3 = inlined_call_operand.vmem [shape: f32[1,32], index: 3, kind: input, shape index: {}]   ;;  %s217_s4 = inlined_call_operand.<no memory space> [shape: f32[1,1], index: 4, kind: input, shape index: {}]   ;;  %s218_s5 = inlined_call_operand.vmem [shape: f32[8,1], index: 5, kind: output, shape index: {}]  }
   0x1   :  { %12 = vsyncpa [#allocation6], 0  ;;  %s145_s18 = smov [#allocation3]   ;;  %s146_s20 = smov [#allocation5]  }
   0x2   :  { %s19_s19 = sshll.u32 %s145_s18, 4  ;;  %s29_s21 = sshll.u32 %s146_s20, 4  ;;  %s20_s19 = int_to_ptr.vmem [resolvable:$true] %s19_s19  ;;  %s30_s21 = int_to_ptr.vmem [resolvable:$true] %s29_s21 }
   0x3   :  { %s97_s24 = scalar_lea.hbm %s213_s0, 128 }
   0x4   :  { %p98_p0 = scmp.ne.s32.totalorder %s213_s0, %s97_s24  ;;  %p101_p1 = scmp.lt.u32.totalorder %s97_s24, %s213_s0 }
   0x6   :  { %p103_p2 = pnand %p101_p1, %p98_p0 }
   0x8   :  { %106 = shalt.err (!%p103_p2)
}
   0x9   :  { %s107_s29 = scalar_lea.vmem %s20_s19, 128  ;;  %p112_p4 = scmp.lt.s32.totalorder %s20_s19, %s20_s19 }
   0xa   :  { %p108_p3 = scmp.ne.s32.totalorder %s20_s19, %s107_s29  ;;  %p113_p5 = scmp.lt.s32.totalorder %s107_s29, %s107_s29 }
   0xc   :  { %p114_p6 = por %p113_p5, %p112_p4 }
   0xe   :  { %p115_p7 = pnand %p114_p6, %p108_p3 }
  0x10   :  { %118 = shalt.err (!%p115_p7)
}
  0x11   :  { %22 = dma.hbm_to_vmem [thread:$0]  %s213_s0, 128, %s20_s19, [#allocation4]  }
  0x12   :  { %s119_s9 = scalar_lea.hbm %s214_s1, 128 }
  0x13   :  { %p120_p8 = scmp.ne.s32.totalorder %s214_s1, %s119_s9  ;;  %p123_p9 = scmp.lt.u32.totalorder %s119_s9, %s214_s1 }
  0x15   :  { %p125_p10 = pnand %p123_p9, %p120_p8 }
  0x17   :  { %128 = shalt.err (!%p125_p10)
}
  0x18   :  { %s129_s14 = scalar_lea.vmem %s30_s21, 128  ;;  %p134_p12 = scmp.lt.s32.totalorder %s30_s21, %s30_s21 }
  0x19   :  { %p130_p11 = scmp.ne.s32.totalorder %s30_s21, %s129_s14  ;;  %p135_p13 = scmp.lt.s32.totalorder %s129_s14, %s129_s14 }
  0x1b   :  { %p136_p0 = por %p135_p13, %p134_p12 }
  0x1d   :  { %p137_p1 = pnand %p136_p0, %p130_p11 }
  0x1f   :  { %140 = shalt.err (!%p137_p1)
}
  0x20   :  { %32 = dma.hbm_to_vmem [thread:$0]  %s214_s1, 128, %s30_s21, [#allocation6]  }
  0x21   :  { %141 = dma.done.wait [#allocation4], 128  }
  0x22   :  { %142 = vsyncadd [#allocation4], 4294967168 }
  0x23   :  { %143 = dma.done.wait [#allocation6], 128  }
  0x24   :  { %144 = vsyncadd [#allocation6], 4294967168  ;;  %v45_v0 = vld [vmem:[#allocation3] sm:$0xff]  ;;  %vm55_vm0 = vcmask 261120   ;;  %v46_v2 = vld [vmem:[#allocation5] sm:$0xff]  ;;  %v72_v9 = vstv %s217_s4  ;;  %vm80_vm1 = vcmask 7168  }
  0x25   :  { %v88_v1 = vld [vmem:[%s215_s2] ss:$0 sm:$0xff] }
  0x26   :  { %v54_v3 = vmul.f32 %v88_v1, %v45_v0  ;;  %v89_v4 = vld [vmem:[%s216_s3] ss:$0 sm:$0xff] }
  0x27   :  { %v66_v5 = vmul.f32 %v89_v4, %v46_v2 }
  0x28   :  { %v56_v6 = vsel %vm55_vm0, %v54_v3, 0.0 }
  0x29   :  { %57 = vadd.xlane.f32.xlu0 %v56_v6  ;;  %v67_v7 = vsel %vm55_vm0, %v66_v5, 0.0 }
  0x2d   :  { %68 = vadd.xlane.f32.xlu0 %v67_v7 }
  0xb6   :  { %v58_v8 = vpop.xlane.xlu0 %57 }
  0xba   :  { %v69_v10 = vpop.xlane.xlu0 %68 }
  0xbb   :  { %v70_v11 = vadd.f32 %v69_v10, %v58_v8 }
  0xbd   :  { %v73_v12 = vadd.f32 %v72_v9, %v70_v11 }
  0xbf   :  { %v90_v13 = vmul.f32 -1.442695, %v73_v12 }
  0xc1   :  { %93 = vpow2.f32 %v90_v13 }
  0xcb   :  { %v94_v14 = vpop.eup %93 }
  0xcc   :  { %v77_v15 = vadd.f32 1.0, %v94_v14 }
  0xce   :  { %95 = vrcp.f32 %v77_v15 }
  0xd8   :  { %v96_v16 = vpop.eup %95 }
  0xd9   :  { %81 = vst.msk [vmem:[%s218_s5] sm:$0xff] %vm80_vm1, %v96_v16 }
  0xda   :  { %86 = vsyncpa [#allocation4], 1 }
  0xdb   :  { %87 = vsyncpa [#allocation6], 1 }

</bundles_post_ra>
